<compile_context>
chip_gen: v5e
topology: v5e:2x2
jax: 0.10.0
libtpu: 0.0.40
codegen_flags: <defaults>
</compile_context>

<pallas_src>
import functools

import jax
import jax.numpy as jnp
from jax.experimental import pallas as pl
from jax.experimental.pallas import tpu as pltpu


def _round_up(x: int, m: int) -> int:
    return ((x + m - 1) // m) * m


def _vmem_budget() -> int:
    """Generation-aware VMEM budget with ~25% headroom."""
    try:
        cap = int(pltpu.get_tpu_info().vmem_capacity_bytes)
    except Exception:
        cap = 64 << 20  # assume the smallest generation (v7x: 64 MiB per TC)
    return int(cap * 3 // 4)  # ~48 MiB on v7x, ~96 MiB on v5e/v6e


# ---------------------------------------------------------------------------
# Kernels
# ---------------------------------------------------------------------------
def _bayes_fused_kernel(x_ref, wmu_ref, wsig_ref, weps_ref,
                        bmu_ref, bsig_ref, beps_ref, o_ref, acc_ref,
                        *, matmul_dtype):
    """y += x @ (mu + sigma*eps).T, accumulated over the K grid axis."""
    k = pl.program_id(2)
    nk = pl.num_programs(2)

    @pl.when(k == 0)
    def _init():
        acc_ref[...] = jnp.zeros_like(acc_ref)

    # Reparameterized weight tile.  sigma was precomputed in the wrapper -> no exp
    # (no EUP work) inside the kernel; construction stays f32, one cast to MXU dtype.
    w = wmu_ref[...] + wsig_ref[...] * weps_ref[...]                  # [tO, tK] f32

    # MXU NT matmul: contract x[tB, tK] with w[tO, tK] over K -- no transpose.
    acc_ref[...] += jax.lax.dot_general(
        x_ref[...], w.astype(matmul_dtype),
        dimension_numbers=(((1,), (1,)), ((), ())),
        preferred_element_type=jnp.float32)

    @pl.when(k == nk - 1)
    def _finalize():
        b = bmu_ref[...] + bsig_ref[...] * beps_ref[...]              # [1, tO]
        o_ref[...] = (acc_ref[...] + b).astype(o_ref.dtype)


def _plain_matmul_kernel(x_ref, w_ref, b_ref, o_ref, acc_ref):
    """Plain tiled NT matmul + bias; W/b are pre-sampled in the wrapper."""
    k = pl.program_id(2)
    nk = pl.num_programs(2)

    @pl.when(k == 0)
    def _init():
        acc_ref[...] = jnp.zeros_like(acc_ref)

    acc_ref[...] += jax.lax.dot_general(
        x_ref[...], w_ref[...],
        dimension_numbers=(((1,), (1,)), ((), ())),
        preferred_element_type=jnp.float32)

    @pl.when(k == nk - 1)
    def _finalize():
        o_ref[...] = (acc_ref[...] + b_ref[...]).astype(o_ref.dtype)


# ---------------------------------------------------------------------------
# Wrappers
# ---------------------------------------------------------------------------
def prepare_bayesian_linear_params(weight_mu, weight_log_var, bias_mu, bias_log_var,
                                   *, block_o=512, block_k=2048):
    """One-time parameter preparation (do NOT repeat per forward call):
    sigma = exp(0.5*log_var) and lane-dense zero padding happen here once."""
    out_dim, in_dim = weight_mu.shape
    to = min(block_o, _round_up(out_dim, 128))
    tk = min(block_k, _round_up(in_dim, 128))
    op = _round_up(out_dim, to)
    kp = _round_up(in_dim, tk)
    # Prefer >= 2 output tiles so the "parallel" axes can shard across v7x's two
    # TensorCores even when the whole batch fits in a single batch tile.
    if op // to == 1 and op % 256 == 0:
        to = op // 2

    padw = ((0, op - out_dim), (0, kp - in_dim))
    padb = ((0, 0), (0, op - out_dim))
    wsig = jnp.exp(0.5 * weight_log_var.astype(jnp.float32))
    bsig = jnp.exp(0.5 * bias_log_var.astype(jnp.float32))
    return dict(
        wmu=jnp.pad(weight_mu.astype(jnp.float32), padw),
        wsig=jnp.pad(wsig, padw),                                      # padded sigma == 0
        bmu=jnp.pad(bias_mu.astype(jnp.float32).reshape(1, out_dim), padb),
        bsig=jnp.pad(bsig.reshape(1, out_dim), padb),
        out_dim=out_dim, in_dim=in_dim, to=to, tk=tk)


def bayesian_linear_apply(params, x, key, *, matmul_dtype=jnp.bfloat16,
                          max_batch_block=1024):
    """y = x @ sample(W).T + sample(b) with one weight/bias draw per call."""
    out_dim, in_dim = params["out_dim"], params["in_dim"]
    assert x.shape[-1] == in_dim
    lead_shape = x.shape[:-1]
    x2 = x.reshape(-1, in_dim)
    batch = x2.shape[0]

    wmu_p, wsig_p = params["wmu"], params["wsig"]
    bmu_p, bsig_p = params["bmu"], params["bsig"]
    op, kp = wmu_p.shape
    to, tk = params["to"], params["tk"]
    out_dtype = x.dtype

    # One reparameterization draw per forward (torch.randn_like semantics), made at
    # the logical parameter shape so it is independent of padding / tiling.
    kw, kb = jax.random.split(key)
    eps_w = jax.random.normal(kw, (out_dim, in_dim), jnp.float32)
    eps_b = jax.random.normal(kb, (out_dim,), jnp.float32)
    weps_p = jnp.pad(eps_w, ((0, op - out_dim), (0, kp - in_dim)))
    beps_p = jnp.pad(eps_b.reshape(1, out_dim), ((0, 0), (0, op - out_dim)))

    x_item = jnp.dtype(matmul_dtype).itemsize
    out_item = jnp.dtype(out_dtype).itemsize

    # Pick the batch tile: cover the whole batch if the (double-buffered) working
    # set plus the in-step sampled-weight temporaries fit the VMEM budget.
    vmem_budget = _vmem_budget()

    def _need(tb_):
        return (2 * (tb_ * tk * x_item + 3 * to * tk * 4 + tb_ * to * out_item)
                + tb_ * to * 4            # f32 accumulator
                + 2 * to * tk * 4         # eps-product / sampled-W temporaries
                + (2 << 20))              # compiler internal scratch headroom

    tb = min(max_batch_block, _round_up(batch, 8))
    while tb > 8 and _need(tb) > vmem_budget:
        tb = _round_up((tb + 1) // 2, 8)
    bp = _round_up(batch, tb)
    nb, no, nk = bp // tb, op // to, kp // tk
    grid = (nb, no, nk)

    # Only x (and the fresh eps) is padded / cast per call; parameters were padded once.
    x_p = jnp.pad(x2, ((0, bp - batch), (0, kp - in_dim))).astype(matmul_dtype)

    compiler_params = pltpu.CompilerParams(
        dimension_semantics=("parallel", "parallel", "arbitrary"),
        vmem_limit_bytes=int(vmem_budget))
    scratch_shapes = [pltpu.VMEM((tb, to), jnp.float32)]
    out_spec = pl.BlockSpec((tb, to), lambda i, j, k: (i, j))
    out_shape = jax.ShapeDtypeStruct((bp, op), out_dtype)

    if nb == 1:
        # Fused path: weight tiles are sampled inside the kernel; each weight tile
        # (mu, sigma, eps) is read from HBM exactly once per forward.
        cost = pl.CostEstimate(
            flops=2 * bp * op * kp + 2 * op * kp,
            transcendentals=0,
            bytes_accessed=int(no * bp * kp * x_item + 3 * op * kp * 4
                               + 3 * op * 4 + bp * op * out_item))
        out_p = pl.pallas_call(
            functools.partial(_bayes_fused_kernel, matmul_dtype=matmul_dtype),
            out_shape=out_shape,
            grid_spec=pltpu.PrefetchScalarGridSpec(
                num_scalar_prefetch=0,
                grid=grid,
                in_specs=[
                    pl.BlockSpec((tb, tk), lambda i, j, k: (i, k)),   # x
                    pl.BlockSpec((to, tk), lambda i, j, k: (j, k)),   # weight_mu
                    pl.BlockSpec((to, tk), lambda i, j, k: (j, k)),   # weight_sigma
                    pl.BlockSpec((to, tk), lambda i, j, k: (j, k)),   # weight eps
                    pl.BlockSpec((1, to), lambda i, j, k: (0, j)),    # bias_mu
                    pl.BlockSpec((1, to), lambda i, j, k: (0, j)),    # bias_sigma
                    pl.BlockSpec((1, to), lambda i, j, k: (0, j)),    # bias eps
                ],
                out_specs=out_spec,
                scratch_shapes=scratch_shapes),
            compiler_params=compiler_params,
            cost_estimate=cost,
        )(x_p, wmu_p, wsig_p, weps_p, bmu_p, bsig_p, beps_p)
    else:
        # Several batch tiles: sample W / b once in a single memory-bound XLA pass
        # and run a plain tiled NT matmul (no per-batch-tile re-sampling).
        w_p = (wmu_p + wsig_p * weps_p).astype(matmul_dtype)
        b_p = bmu_p + bsig_p * beps_p
        cost = pl.CostEstimate(
            flops=2 * bp * op * kp,
            transcendentals=0,
            bytes_accessed=int(no * bp * kp * x_item + nb * op * kp * x_item
                               + op * 4 + bp * op * out_item))
        out_p = pl.pallas_call(
            _plain_matmul_kernel,
            out_shape=out_shape,
            grid_spec=pltpu.PrefetchScalarGridSpec(
                num_scalar_prefetch=0,
                grid=grid,
                in_specs=[
                    pl.BlockSpec((tb, tk), lambda i, j, k: (i, k)),   # x
                    pl.BlockSpec((to, tk), lambda i, j, k: (j, k)),   # sampled W
                    pl.BlockSpec((1, to), lambda i, j, k: (0, j)),    # sampled bias
                ],
                out_specs=out_spec,
                scratch_shapes=scratch_shapes),
            compiler_params=compiler_params,
            cost_estimate=cost,
        )(x_p, w_p, b_p)

    return out_p[:batch, :out_dim].reshape(*lead_shape, out_dim)


def bayesian_linear(x, weight_mu, weight_log_var, bias_mu, bias_log_var, key,
                    *, matmul_dtype=jnp.bfloat16, **kwargs):
    """Convenience one-shot wrapper (prefer prepare_* once + apply per step)."""
    params = prepare_bayesian_linear_params(weight_mu, weight_log_var,
                                            bias_mu, bias_log_var)
    return bayesian_linear_apply(params, x, key, matmul_dtype=matmul_dtype, **kwargs)


# ---------------------------------------------------------------------------
# Self-test
# ---------------------------------------------------------------------------
if __name__ == "__main__":
    batch, input_dim, output_dim = 8, 64, 32

    root = jax.random.PRNGKey(0)
    k_x, k_wmu, k_wlv, k_bmu, k_blv = jax.random.split(root, 5)

    # Parameters matching the torch init distributions:
    #   weight_mu ~ N(0, 0.1), weight_log_var ~ N(-3, 0.1), same for bias.
    x = jax.random.normal(k_x, (batch, input_dim), dtype=jnp.float32)
    weight_mu = 0.1 * jax.random.normal(k_wmu, (output_dim, input_dim), jnp.float32)
    weight_log_var = -3.0 + 0.1 * jax.random.normal(k_wlv, (output_dim, input_dim), jnp.float32)
    bias_mu = 0.1 * jax.random.normal(k_bmu, (output_dim,), jnp.float32)
    bias_log_var = -3.0 + 0.1 * jax.random.normal(k_blv, (output_dim,), jnp.float32)

    ref_det = jnp.dot(x, weight_mu.T, precision=jax.lax.Precision.HIGHEST) + bias_mu

    # --- Check 1: sigma -> ~0 collapses to a plain linear layer. ---
    tiny_wlv = jnp.full_like(weight_log_var, -80.0)   # sigma ~ 4e-18
    tiny_blv = jnp.full_like(bias_log_var, -80.0)
    det_params = prepare_bayesian_linear_params(weight_mu, tiny_wlv, bias_mu, tiny_blv)

    out_det = jax.block_until_ready(
        bayesian_linear_apply(det_params, x, jax.random.PRNGKey(1),
                              matmul_dtype=jnp.float32))
    assert out_det.shape == (batch, output_dim)
    assert jnp.allclose(out_det, ref_det, atol=2e-3, rtol=2e-3)

    # Default bf16-MXU fast path (v5e/v6e/v7x), looser tolerance.
    out_det_bf16 = jax.block_until_ready(
        bayesian_linear_apply(det_params, x, jax.random.PRNGKey(1)))
    assert jnp.allclose(out_det_bf16, ref_det, atol=5e-2, rtol=5e-2)

    # Pre-sampled-W fallback path (forced multiple batch tiles).
    x_big = jax.random.normal(jax.random.PRNGKey(3), (16, input_dim), jnp.float32)
    ref_big = jnp.dot(x_big, weight_mu.T, precision=jax.lax.Precision.HIGHEST) + bias_mu
    out_big = jax.block_until_ready(
        bayesian_linear_apply(det_params, x_big, jax.random.PRNGKey(5),
                              matmul_dtype=jnp.float32, max_batch_block=8))
    assert jnp.allclose(out_big, ref_big, atol=2e-3, rtol=2e-3)

    # --- Check 2: stochastic path -- reproducible per key, noise injected. ---
    params = prepare_bayesian_linear_params(weight_mu, weight_log_var, bias_mu, bias_log_var)
    out_a = jax.block_until_ready(bayesian_linear_apply(params, x, jax.random.PRNGKey(42)))
    out_b = jax.block_until_ready(bayesian_linear_apply(params, x, jax.random.PRNGKey(42)))
    out_c = jax.block_until_ready(bayesian_linear_apply(params, x, jax.random.PRNGKey(7)))

    assert jnp.array_equal(out_a, out_b)        # same key -> identical sample
    assert not jnp.array_equal(out_a, out_c)    # different key -> different sample
    assert bool(jnp.all(jnp.isfinite(out_a)))

    # Noise magnitude sanity: per-element std ~ sigma * sqrt(sum_k x_k^2 + 1),
    # sigma = exp(0.5 * -3) ~ 0.223.  Very loose bounds to avoid flakiness.
    sigma_scale = float(jnp.exp(0.5 * -3.0))
    expected_std = sigma_scale * float(jnp.sqrt(jnp.mean(jnp.sum(x ** 2, axis=1)) + 1.0))
    measured_std = float(jnp.std(out_a - ref_det))
    assert measured_std > 0.05 * expected_std   # noise actually applied
    assert measured_std < 8.0 * expected_std    # noise at a sane scale

    print("KERNEL_OK")
</pallas_src>

<mosaic_0001>
module attributes {stable_mosaic.version = 11 : i64} {
  func.func @_bayes_fused_kernel(%arg0: i32, %arg1: i32, %arg2: i32, %arg3: memref<8x128xf32, #tpu.memory_space<vmem>>, %arg4: memref<128x128xf32, #tpu.memory_space<vmem>>, %arg5: memref<128x128xf32, #tpu.memory_space<vmem>>, %arg6: memref<128x128xf32, #tpu.memory_space<vmem>>, %arg7: memref<1x128xf32, #tpu.memory_space<vmem>>, %arg8: memref<1x128xf32, #tpu.memory_space<vmem>>, %arg9: memref<1x128xf32, #tpu.memory_space<vmem>>, %arg10: memref<8x128xf32, #tpu.memory_space<vmem>>, %arg11: memref<8x128xf32, #tpu.memory_space<vmem>>) attributes {dimension_semantics = [#tpu.dimension_semantics<parallel>, #tpu.dimension_semantics<parallel>, #tpu.dimension_semantics<arbitrary>], iteration_bounds = array<i64: 1, 1, 1>, scalar_prefetch = 0 : i64, scratch_operands = 1 : i64, tpu.core_type = #tpu.core_type<tc>, window_params = [{transform_indices = @transform_0, window_bounds = array<i64: 8, 128>}, {transform_indices = @transform_1, window_bounds = array<i64: 128, 128>}, {transform_indices = @transform_2, window_bounds = array<i64: 128, 128>}, {transform_indices = @transform_3, window_bounds = array<i64: 128, 128>}, {transform_indices = @transform_4, window_bounds = array<i64: 1, 128>}, {transform_indices = @transform_5, window_bounds = array<i64: 1, 128>}, {transform_indices = @transform_6, window_bounds = array<i64: 1, 128>}, {transform_indices = @transform_7, window_bounds = array<i64: 8, 128>}]} {
    %c0_i32 = arith.constant 0 : i32
    %0 = arith.cmpi eq, %arg2, %c0_i32 : i32
    %1 = arith.extui %0 : i1 to i32
    %c0_i32_0 = arith.constant 0 : i32
    %2 = arith.cmpi ne, %1, %c0_i32_0 : i32
    scf.if %2 {
      %cst_14 = arith.constant 0.000000e+00 : f32
      %16 = vector.broadcast %cst_14 : f32 to vector<8x128xf32>
      %c0_15 = arith.constant 0 : index
      %c0_16 = arith.constant 0 : index
      %17 = vector.load %arg11[%c0_15, %c0_16] : memref<8x128xf32, #tpu.memory_space<vmem>>, vector<8x128xf32>
      tpu.vector_store %arg11[%c0_15, %c0_16], %16 {strides = array<i32>} : memref<8x128xf32, #tpu.memory_space<vmem>>, vector<8x128xf32>,
    } else {
    }
    %c0 = arith.constant 0 : index
    %c0_1 = arith.constant 0 : index
    %3 = vector.load %arg4[%c0, %c0_1] : memref<128x128xf32, #tpu.memory_space<vmem>>, vector<128x128xf32>
    %c0_2 = arith.constant 0 : index
    %c0_3 = arith.constant 0 : index
    %4 = vector.load %arg5[%c0_2, %c0_3] : memref<128x128xf32, #tpu.memory_space<vmem>>, vector<128x128xf32>
    %c0_4 = arith.constant 0 : index
    %c0_5 = arith.constant 0 : index
    %5 = vector.load %arg6[%c0_4, %c0_5] : memref<128x128xf32, #tpu.memory_space<vmem>>, vector<128x128xf32>
    %6 = arith.mulf %4, %5 : vector<128x128xf32>
    %7 = arith.addf %3, %6 : vector<128x128xf32>
    %c0_6 = arith.constant 0 : index
    %c0_7 = arith.constant 0 : index
    %8 = vector.load %arg11[%c0_6, %c0_7] : memref<8x128xf32, #tpu.memory_space<vmem>>, vector<8x128xf32>
    %c0_8 = arith.constant 0 : index
    %c0_9 = arith.constant 0 : index
    %9 = vector.load %arg3[%c0_8, %c0_9] : memref<8x128xf32, #tpu.memory_space<vmem>>, vector<8x128xf32>
    %cst = arith.constant dense<0.000000e+00> : vector<8x128xf32>
    %10 = tpu.matmul %9, %7, %cst {dimension_numbers = #tpu.dot_dimension_numbers<[1], [1], [0], [0], [0, 0, 1, 0], [], []>} : vector<8x128xf32>, vector<128x128xf32>, vector<8x128xf32> -> vector<8x128xf32>
    %11 = arith.addf %8, %10 : vector<8x128xf32>
    %c0_10 = arith.constant 0 : index
    %c0_11 = arith.constant 0 : index
    %12 = vector.load %arg11[%c0_10, %c0_11] : memref<8x128xf32, #tpu.memory_space<vmem>>, vector<8x128xf32>
    tpu.vector_store %arg11[%c0_10, %c0_11], %11 {strides = array<i32>} : memref<8x128xf32, #tpu.memory_space<vmem>>, vector<8x128xf32>,
    %c0_i32_12 = arith.constant 0 : i32
    %13 = arith.cmpi eq, %arg2, %c0_i32_12 : i32
    %14 = arith.extui %13 : i1 to i32
    %c0_i32_13 = arith.constant 0 : i32
    %15 = arith.cmpi ne, %14, %c0_i32_13 : i32
    scf.if %15 {
      %c0_14 = arith.constant 0 : index
      %c0_15 = arith.constant 0 : index
      %16 = vector.load %arg7[%c0_14, %c0_15] : memref<1x128xf32, #tpu.memory_space<vmem>>, vector<1x128xf32>
      %c0_16 = arith.constant 0 : index
      %c0_17 = arith.constant 0 : index
      %17 = vector.load %arg8[%c0_16, %c0_17] : memref<1x128xf32, #tpu.memory_space<vmem>>, vector<1x128xf32>
      %c0_18 = arith.constant 0 : index
      %c0_19 = arith.constant 0 : index
      %18 = vector.load %arg9[%c0_18, %c0_19] : memref<1x128xf32, #tpu.memory_space<vmem>>, vector<1x128xf32>
      %19 = arith.mulf %17, %18 : vector<1x128xf32>
      %20 = arith.addf %16, %19 : vector<1x128xf32>
      %c0_20 = arith.constant 0 : index
      %c0_21 = arith.constant 0 : index
      %21 = vector.load %arg11[%c0_20, %c0_21] : memref<8x128xf32, #tpu.memory_space<vmem>>, vector<8x128xf32>
      %22 = vector.broadcast %20 : vector<1x128xf32> to vector<8x128xf32>
      %23 = arith.addf %21, %22 : vector<8x128xf32>
      %c0_22 = arith.constant 0 : index
      %c0_23 = arith.constant 0 : index
      %24 = vector.load %arg10[%c0_22, %c0_23] : memref<8x128xf32, #tpu.memory_space<vmem>>, vector<8x128xf32>
      tpu.vector_store %arg10[%c0_22, %c0_23], %23 {strides = array<i32>} : memref<8x128xf32, #tpu.memory_space<vmem>>, vector<8x128xf32>,
    } else {
    }
    return
  }
  func.func @transform_0(%arg0: i32, %arg1: i32, %arg2: i32) -> (i32, i32) {
    %c0_i32 = arith.constant 0 : i32
    return %arg0, %arg2 : i32, i32
  }
  func.func @transform_1(%arg0: i32, %arg1: i32, %arg2: i32) -> (i32, i32) {
    %c0_i32 = arith.constant 0 : i32
    return %arg1, %arg2 : i32, i32
  }
  func.func @transform_2(%arg0: i32, %arg1: i32, %arg2: i32) -> (i32, i32) {
    %c0_i32 = arith.constant 0 : i32
    return %arg1, %arg2 : i32, i32
  }
  func.func @transform_3(%arg0: i32, %arg1: i32, %arg2: i32) -> (i32, i32) {
    %c0_i32 = arith.constant 0 : i32
    return %arg1, %arg2 : i32, i32
  }
  func.func @transform_4(%arg0: i32, %arg1: i32, %arg2: i32) -> (i32, i32) {
    %c0_i32 = arith.constant 0 : i32
    %c0_i32_0 = arith.constant 0 : i32
    return %c0_i32, %arg1 : i32, i32
  }
  func.func @transform_5(%arg0: i32, %arg1: i32, %arg2: i32) -> (i32, i32) {
    %c0_i32 = arith.constant 0 : i32
    %c0_i32_0 = arith.constant 0 : i32
    return %c0_i32, %arg1 : i32, i32
  }
  func.func @transform_6(%arg0: i32, %arg1: i32, %arg2: i32) -> (i32, i32) {
    %c0_i32 = arith.constant 0 : i32
    %c0_i32_0 = arith.constant 0 : i32
    return %c0_i32, %arg1 : i32, i32
  }
  func.func @transform_7(%arg0: i32, %arg1: i32, %arg2: i32) -> (i32, i32) {
    %c0_i32 = arith.constant 0 : i32
    return %arg0, %arg1 : i32, i32
  }
}

</mosaic_0001>

<bundles_post_ra>
// kernel: tpu_custom_call.1
= control target key start
LH: loop header
LB: loop body
LE: loop exit
PB: predicated region body
PF: predicated region fallthrough
CT: control target
= control target key end

     0   :  { %12 = vsyncpa [#allocation4], 0  ;;  %s436_s0 = inlined_call_operand.hbm [shape: f32[8,128], index: 0, kind: input, shape index: {}]   ;;  %s437_s1 = inlined_call_operand.hbm [shape: f32[128,128], index: 1, kind: input, shape index: {}]   ;;  %s438_s2 = inlined_call_operand.hbm [shape: f32[128,128], index: 2, kind: input, shape index: {}]   ;;  %s439_s3 = inlined_call_operand.hbm [shape: f32[128,128], index: 3, kind: input, shape index: {}]   ;;  %s440_s4 = inlined_call_operand.vmem [shape: f32[1,128], index: 4, kind: input, shape index: {}]   ;;  %s441_s5 = inlined_call_operand.vmem [shape: f32[1,128], index: 5, kind: input, shape index: {}]   ;;  %s442_s6 = inlined_call_operand.vmem [shape: f32[1,128], index: 6, kind: input, shape index: {}]   ;;  %s443_s7 = inlined_call_operand.hbm [shape: f32[8,128], index: 7, kind: output, shape index: {}]  }
   0x1   :  { %13 = vsyncpa [#allocation7], 0 }
   0x2   :  { %14 = vsyncpa [#allocation10], 0  ;;  %s31_s26 = sshll.u32 %s437_s1, 4  ;;  %s32_s26 = int_to_ptr.hbm [resolvable:$true] %s31_s26 }
   0x3   :  { %15 = vsyncpa [#allocation5], 0  ;;  %s365_s27 = smov [#allocation6]   ;;  %s21_s8 = sshll.u32 %s436_s0, 4  ;;  %s22_s8 = int_to_ptr.hbm [resolvable:$true] %s21_s8 }
   0x4   :  { %s33_s28 = sshll.u32 %s365_s27, 4  ;;  %s366_s9 = smov 128   ;;  %s34_s28 = int_to_ptr.vmem [resolvable:$true] %s33_s28 }
   0x5   :  { %s367_s10 = smov 8   ;;  %s368_s11 = smov [#allocation3]  }
   0x6   :  { %39 = dma.hbm_to_vmem [thread:$0]  %s32_s26, 2048, %s34_s28, [#allocation7], %s366_s9, %s366_s9, %s367_s10  }
   0x7   :  { %s23_s12 = sshll.u32 %s368_s11, 4  ;;  %s44_s15 = sshll.u32 %s438_s2, 4  ;;  %s24_s12 = int_to_ptr.vmem [resolvable:$true] %s23_s12  ;;  %s45_s15 = int_to_ptr.hbm [resolvable:$true] %s44_s15 }
   0x8   :  { %26 = dma.hbm_to_vmem [thread:$0]  %s22_s8, 128, %s24_s12, [#allocation4]  }
   0x9   :  { %s57_s17 = sshll.u32 %s439_s3, 4  ;;  %s369_s18 = smov [#allocation8]   ;;  %s58_s17 = int_to_ptr.hbm [resolvable:$true] %s57_s17 }
   0xa   :  { %s46_s19 = sshll.u32 %s369_s18, 4  ;;  %s370_s0 = smov [#allocation9]   ;;  %s47_s19 = int_to_ptr.vmem [resolvable:$true] %s46_s19 }
   0xb   :  { %52 = dma.hbm_to_vmem [thread:$0]  %s45_s15, 2048, %s47_s19, [#allocation7], %s366_s9, %s366_s9, %s367_s10  }
   0xc   :  { %s59_s20 = sshll.u32 %s370_s0, 4  ;;  %s60_s20 = int_to_ptr.vmem [resolvable:$true] %s59_s20 }
   0xd   :  { %65 = dma.hbm_to_vmem [thread:$0]  %s58_s17, 2048, %s60_s20, [#allocation10], %s366_s9, %s366_s9, %s367_s10  }
   0xe   :  { %357 = dma.done.wait [#allocation4], 128  }
   0xf   :  { %358 = vsyncadd [#allocation4], 4294967168 }
  0x10   :  { %359 = dma.done.wait [#allocation7], 4096  }
  0x11   :  { %360 = vsyncadd [#allocation7], 4294963200 }
  0x12   :  { %361 = dma.done.wait [#allocation10], 2048  }
  0x13   :  { %362 = vsyncadd [#allocation10], 4294965248  ;;  %v108_v0 = vld [vmem:[#allocation6 + $0x78] sm:$0xff]  ;;  %v123_v4 = vld [vmem:[#allocation8 + $0x70] sm:$0xff]  ;;  %s371_s25 = smov [#allocation11]   ;;  %s218_s29 = sshll.u32 %s443_s7, 4  ;;  %s219_s29 = int_to_ptr.hbm [resolvable:$true] %s218_s29 }
  0x14   :  { %v124_v1 = vld [vmem:[#allocation8 + $0x78] sm:$0xff]  ;;  %v139_v5 = vld [vmem:[#allocation9 + $0x70] sm:$0xff]  ;;  %v122_v8 = vld [vmem:[#allocation8 + $0x68] sm:$0xff]  ;;  %s216_s26 = sshll.u32 %s371_s25, 4  ;;  %s217_s26 = int_to_ptr.vmem [resolvable:$true] %s216_s26 }
  0x15   :  { %v140_v2 = vld [vmem:[#allocation9 + $0x78] sm:$0xff]  ;;  %v107_v6 = vld [vmem:[#allocation6 + $0x70] sm:$0xff]  ;;  %v155_v7 = vmul.f32 %v139_v5, %v123_v4  ;;  %v138_v9 = vld [vmem:[#allocation9 + $0x68] sm:$0xff] }
  0x16   :  { %v156_v3 = vmul.f32 %v140_v2, %v124_v1  ;;  %v154_v12 = vmul.f32 %v138_v9, %v122_v8  ;;  %v106_v13 = vld [vmem:[#allocation6 + $0x68] sm:$0xff]  ;;  %v121_v14 = vld [vmem:[#allocation8 + $0x60] sm:$0xff]  ;;  %v120_v19 = vld [vmem:[#allocation8 + $0x58] sm:$0xff] }
  0x17   :  { %v171_v11 = vadd.f32 %v155_v7, %v107_v6  ;;  %v137_v15 = vld [vmem:[#allocation9 + $0x60] sm:$0xff]  ;;  %v136_v20 = vld [vmem:[#allocation9 + $0x58] sm:$0xff]  ;;  %v119_v24 = vld [vmem:[#allocation8 + $0x50] sm:$0xff] }
  0x18   :  { %v172_v10 = vadd.f32 %v156_v3, %v108_v0  ;;  %v170_v16 = vadd.f32 %v154_v12, %v106_v13  ;;  %v153_v17 = vmul.f32 %v137_v15, %v121_v14  ;;  %v105_v18 = vld [vmem:[#allocation6 + $0x60] sm:$0xff]  ;;  %v152_v22 = vmul.f32 %v136_v20, %v120_v19  ;;  %v104_v23 = vld [vmem:[#allocation6 + $0x58] sm:$0xff]  ;;  %v135_v25 = vld [vmem:[#allocation9 + $0x50] sm:$0xff] }
  0x19   :  { %v151_v27 = vmul.f32 %v135_v25, %v119_v24  ;;  %v103_v28 = vld [vmem:[#allocation6 + $0x50] sm:$0xff]  ;;  %v118_v29 = vld [vmem:[#allocation8 + $0x48] sm:$0xff]  ;;  %v117_v34 = vld [vmem:[#allocation8 + $0x40] sm:$0xff] }
  0x1a   :  { %175 = vmatpush.xpose.msra.mxu0 %v172_v10  ;;  %v169_v21 = vadd.f32 %v153_v17, %v105_v18  ;;  %v168_v26 = vadd.f32 %v152_v22, %v104_v23  ;;  %v134_v30 = vld [vmem:[#allocation9 + $0x48] sm:$0xff]  ;;  %v133_v35 = vld [vmem:[#allocation9 + $0x40] sm:$0xff]  ;;  %v116_v39 = vld [vmem:[#allocation8 + $0x38] sm:$0xff] }
  0x1b   :  { %v167_v31 = vadd.f32 %v151_v27, %v103_v28  ;;  %v150_v32 = vmul.f32 %v134_v30, %v118_v29  ;;  %v102_v33 = vld [vmem:[#allocation6 + $0x48] sm:$0xff]  ;;  %v149_v37 = vmul.f32 %v133_v35, %v117_v34  ;;  %v101_v38 = vld [vmem:[#allocation6 + $0x40] sm:$0xff]  ;;  %v132_v40 = vld [vmem:[#allocation9 + $0x38] sm:$0xff] }
  0x1c   :  { %v148_v42 = vmul.f32 %v132_v40, %v116_v39  ;;  %v100_v43 = vld [vmem:[#allocation6 + $0x38] sm:$0xff]  ;;  %v115_v44 = vld [vmem:[#allocation8 + $0x30] sm:$0xff]  ;;  %v114_v49 = vld [vmem:[#allocation8 + $0x28] sm:$0xff] }
  0x1d   :  { %v166_v36 = vadd.f32 %v150_v32, %v102_v33  ;;  %v165_v41 = vadd.f32 %v149_v37, %v101_v38  ;;  %v131_v45 = vld [vmem:[#allocation9 + $0x30] sm:$0xff]  ;;  %v130_v50 = vld [vmem:[#allocation9 + $0x28] sm:$0xff]  ;;  %v113_v54 = vld [vmem:[#allocation8 + $0x20] sm:$0xff] }
  0x1e   :  { %176 = vmatpush.xpose.msra.mxu0 %v171_v11  ;;  %v164_v46 = vadd.f32 %v148_v42, %v100_v43  ;;  %v147_v47 = vmul.f32 %v131_v45, %v115_v44  ;;  %v99_v48 = vld [vmem:[#allocation6 + $0x30] sm:$0xff]  ;;  %v146_v52 = vmul.f32 %v130_v50, %v114_v49  ;;  %v98_v53 = vld [vmem:[#allocation6 + $0x28] sm:$0xff]  ;;  %v129_v55 = vld [vmem:[#allocation9 + $0x20] sm:$0xff] }
  0x1f   :  { %v145_v57 = vmul.f32 %v129_v55, %v113_v54  ;;  %v97_v58 = vld [vmem:[#allocation6 + $0x20] sm:$0xff]  ;;  %v112_v59 = vld [vmem:[#allocation8 + $0x18] sm:$0xff]  ;;  %v111_v0 = vld [vmem:[#allocation8 + $0x10] sm:$0xff] }
  0x20   :  { %v163_v51 = vadd.f32 %v147_v47, %v99_v48  ;;  %v162_v56 = vadd.f32 %v146_v52, %v98_v53  ;;  %v128_v60 = vld [vmem:[#allocation9 + $0x18] sm:$0xff]  ;;  %v127_v1 = vld [vmem:[#allocation9 + $0x10] sm:$0xff]  ;;  %v110_v5 = vld [vmem:[#allocation8 + $0x8] sm:$0xff] }
  0x21   :  { %v161_v61 = vadd.f32 %v145_v57, %v97_v58  ;;  %v144_v62 = vmul.f32 %v128_v60, %v112_v59  ;;  %v96_v63 = vld [vmem:[#allocation6 + $0x18] sm:$0xff]  ;;  %v143_v3 = vmul.f32 %v127_v1, %v111_v0  ;;  %v95_v4 = vld [vmem:[#allocation6 + $0x10] sm:$0xff]  ;;  %v126_v6 = vld [vmem:[#allocation9 + $0x8] sm:$0xff] }
  0x22   :  { %177 = vmatpush.xpose.msra.mxu0 %v170_v16  ;;  %v142_v8 = vmul.f32 %v126_v6, %v110_v5  ;;  %v94_v9 = vld [vmem:[#allocation6 + $0x8] sm:$0xff]  ;;  %v109_v10 = vld [vmem:[#allocation8] sm:$0xff]  ;;  %v174_v16 = vld [vmem:[#allocation3] sm:$0xff] }
  0x23   :  { %v160_v2 = vadd.f32 %v144_v62, %v96_v63  ;;  %v159_v7 = vadd.f32 %v143_v3, %v95_v4  ;;  %v125_v11 = vld [vmem:[#allocation9] sm:$0xff]  ;;  %v201_v17 = vld [vmem:[%s441_s5] sm:$0x1] }
  0x24   :  { %v158_v12 = vadd.f32 %v142_v8, %v94_v9  ;;  %v141_v13 = vmul.f32 %v125_v11, %v109_v10  ;;  %v93_v14 = vld [vmem:[#allocation6] sm:$0xff]  ;;  %v202_v18 = vld [vmem:[%s442_s6] sm:$0x1] }
  0x25   :  { %v203_v19 = vmul.f32 %v202_v18, %v201_v17  ;;  %v200_v20 = vld [vmem:[%s440_s4] sm:$0x1] }
  0x26   :  { %178 = vmatpush.xpose.msra.mxu0 %v169_v21  ;;  %v157_v15 = vadd.f32 %v141_v13, %v93_v14 }
  0x27   :  { %v204_v21 = vadd.f32 %v203_v19, %v200_v20 }
  0x29   :  { %v207_v22 = vperm.slane %v204_v21, 0 }
  0x2a   :  { %179 = vmatpush.xpose.msra.mxu0 %v168_v26 }
  0x2e   :  { %180 = vmatpush.xpose.msra.mxu0 %v167_v31 }
  0x32   :  { %181 = vmatpush.xpose.msra.mxu0 %v166_v36 }
  0x36   :  { %182 = vmatpush.xpose.msra.mxu0 %v165_v41 }
  0x3a   :  { %183 = vmatpush.xpose.msra.mxu0 %v164_v46 }
  0x3e   :  { %184 = vmatpush.xpose.msra.mxu0 %v163_v51 }
  0x42   :  { %185 = vmatpush.xpose.msra.mxu0 %v162_v56 }
  0x46   :  { %186 = vmatpush.xpose.msra.mxu0 %v161_v61 }
  0x4a   :  { %187 = vmatpush.xpose.msra.mxu0 %v160_v2 }
  0x4e   :  { %188 = vmatpush.xpose.msra.mxu0 %v159_v7 }
  0x52   :  { %189 = vmatpush.xpose.msra.mxu0 %v158_v12 }
  0x56   :  { %190 = vmatpush.xpose.msra.mxu0 %v157_v15 }
  0x59   :  { %191 = vmatmul.f32.vlgmr.msra.gmra.mxu0 %v174_v16 }
  0xd6   :  { %v192_v23 = vpop.f32.mrf.mxu0 }
  0xd7   :  { %v209_v24 = vadd.f32 %v207_v22, %v192_v23 }
  0xd9   :  { %210 = vst [vmem:[#allocation11] sm:$0xff] %v209_v24 }
  0xda   :  { %221 = dma.vmem_to_hbm [thread:$0]  %s217_s26, 128, %s219_s29, [#allocation5]  }
  0xdb   :  { %363 = dma.done.wait [#allocation5], 128  }
  0xdc   :  { %364 = vsyncadd [#allocation5], 4294967168 }
  0xdd   :  { %226 = vsyncpa [#allocation4], 1 }
  0xde   :  { %227 = vsyncpa [#allocation7], 1 }
  0xdf   :  { %228 = vsyncpa [#allocation10], 1 }
  0xe0   :  { %229 = vsyncpa [#allocation5], 1 }

</bundles_post_ra>
